<compile_context>
chip_gen: v5e
topology: v5e:2x2
jax: 0.10.0
libtpu: 0.0.40
codegen_flags: <defaults>
</compile_context>

<pallas_src>
import numpy as np
import jax
import jax.numpy as jnp
from jax import lax
from jax.experimental import pallas as pl
from jax.experimental.pallas import tpu as pltpu


_LANE = 128
_DEFAULT_TILES_PER_BLOCK = 1024   # up to 4 MiB (f32) per input per grid step


def _sublane_count(itemsize):
    # vreg sublane packing per element width.
    return {4: 8, 2: 16, 1: 32}.get(int(itemsize), 8)


def _make_kernel(*, n_tiles, tpb, sub, chunk, ragged):
    """Build the per-block partial-sum kernel.

    pred_ref / targ_ref : (tpb, sub, 128) blocks in native dtype.
    out_ref             : (sub, 128) f32 per-block partial sums.
    """
    n_chunks = tpb // chunk
    unroll = 8 if n_chunks >= 8 else True

    def kernel(pred_ref, targ_ref, out_ref):
        block_tile0 = pl.program_id(0) * tpb

        def body(j, acc):
            start = pl.multiple_of(j * chunk, chunk)
            p = pred_ref[pl.ds(start, chunk)].astype(jnp.float32)
            t = targ_ref[pl.ds(start, chunk)].astype(jnp.float32)
            d = p - t
            sq = d * d
            if ragged:
                # Last grid block reads past n_tiles (Pallas pads with
                # garbage); select-to-zero before reducing (NaN-safe).
                tile_idx = (block_tile0 + start
                            + lax.broadcasted_iota(jnp.int32,
                                                   (chunk, sub, _LANE), 0))
                sq = jnp.where(tile_idx < n_tiles, sq, 0.0)
            # Reduce only over the leading (tile) axis: plain VPU vreg adds,
            # no cross-lane XLU work, accumulator stays in a few vregs.
            return acc + jnp.sum(sq, axis=0)

        acc = lax.fori_loop(0, n_chunks, body,
                            jnp.zeros((sub, _LANE), jnp.float32),
                            unroll=unroll)
        out_ref[...] = acc

    return kernel


def fourier_loss(pred, target, *, tiles_per_block=_DEFAULT_TILES_PER_BLOCK):
    """Pallas implementation of FourierLoss.forward(pred, target).

    pred, target: real arrays of shape (..., H, W) (e.g. NCHW like PyTorch).
    Returns mean((fft2(pred) - fft2(target))**2) over stacked real/imag
    components == sum((pred - target)^2) / (2 * prod(leading dims)).
    """
    assert pred.shape == target.shape, "pred/target shape mismatch"
    assert pred.ndim >= 2, "expect (..., H, W)"
    lead_shape = pred.shape[:-2]
    lead = int(np.prod(lead_shape)) if lead_shape else 1
    total = int(np.prod(pred.shape))

    isz_p = np.dtype(pred.dtype).itemsize
    isz_t = np.dtype(target.dtype).itemsize
    sub = _sublane_count(max(isz_p, isz_t))
    tile_elems = sub * _LANE

    pred_flat = pred.reshape(-1)      # reshape of contiguous array: free
    targ_flat = target.reshape(-1)

    n_tiles = total // tile_elems
    n_main = n_tiles * tile_elems
    tail = total - n_main

    # Sub-tile remainder (< tile_elems elements): tiny jnp epilogue, so we
    # never jnp.pad (full-array copy) the big operands.
    if tail:
        dp = (pred_flat[n_main:].astype(jnp.float32)
              - targ_flat[n_main:].astype(jnp.float32))
        tail_sum = jnp.sum(dp * dp)
    else:
        tail_sum = jnp.float32(0.0)

    if n_tiles == 0:
        return tail_sum / jnp.float32(2 * lead)

    # As many tiles per grid step as allowed, but keep >= 2 blocks so the
    # 'parallel' grid axis feeds both v7x TensorCores.
    tpb = max(1, min(int(tiles_per_block), pl.cdiv(n_tiles, 2)))
    if tpb >= 8:
        tpb -= tpb % 8                 # keep the 8-tile chunk loop exact
    chunk = 8 if tpb % 8 == 0 else 1
    n_blocks = pl.cdiv(n_tiles, tpb)
    ragged = (n_tiles % tpb) != 0

    if tail:
        # Only non-tile-aligned totals pay this prefix slice (XLA may
        # materialize it); aligned totals are fully zero-copy.
        pred_main = pred_flat[:n_main]
        targ_main = targ_flat[:n_main]
    else:
        pred_main = pred_flat
        targ_main = targ_flat
    pred3d = pred_main.reshape(n_tiles, sub, _LANE)
    targ3d = targ_main.reshape(n_tiles, sub, _LANE)

    in_spec = pl.BlockSpec((tpb, sub, _LANE), lambda i: (i, 0, 0))
    out_spec = pl.BlockSpec((sub, _LANE), lambda i: (i, 0))

    # 2 inputs x 2 pipeline buffers x block bytes, plus headroom; cap for
    # v7x's 64 MiB physical VMEM.
    block_bytes = tpb * tile_elems * (isz_p + isz_t)
    vmem_limit = int(min(48 << 20, 2 * block_bytes + (16 << 20)))

    kernel = _make_kernel(n_tiles=n_tiles, tpb=tpb, sub=sub,
                          chunk=chunk, ragged=ragged)

    partials = pl.pallas_call(
        kernel,
        out_shape=jax.ShapeDtypeStruct((n_blocks * sub, _LANE), jnp.float32),
        grid_spec=pltpu.PrefetchScalarGridSpec(
            num_scalar_prefetch=0,
            grid=(n_blocks,),
            in_specs=[in_spec, in_spec],
            out_specs=out_spec,
        ),
        compiler_params=pltpu.CompilerParams(
            dimension_semantics=("parallel",),
            vmem_limit_bytes=vmem_limit),
        cost_estimate=pl.CostEstimate(
            flops=3 * n_main,                         # sub + mul + add / elem
            transcendentals=0,
            bytes_accessed=n_main * (isz_p + isz_t)
                           + n_blocks * tile_elems * 4),
    )(pred3d, targ3d)

    sum_sq = jnp.sum(partials, dtype=jnp.float32) + tail_sum

    # Parseval: sum(|FFT2(d)|^2) = H*W * sum(d^2)
    # loss = H*W*sum(d^2) / (2*numel) = sum(d^2) / (2 * prod(lead dims))
    return sum_sq / jnp.float32(2 * lead)


def _reference_loss_fft(pred, target):
    """FFT-based reference (matches the original torch semantics)."""
    pf = jnp.fft.fft2(pred.astype(jnp.float32))
    tf = jnp.fft.fft2(target.astype(jnp.float32))
    d = pf - tf
    return (jnp.sum(jnp.real(d) ** 2) + jnp.sum(jnp.imag(d) ** 2)) / (
        2.0 * pred.size)


def _reference_loss_direct(pred, target, lead):
    """Exact Parseval-identity reference (no FFT needed)."""
    d = pred.astype(jnp.float32) - target.astype(jnp.float32)
    return jnp.sum(d * d) / jnp.float32(2 * lead)


if __name__ == "__main__":
    key = jax.random.PRNGKey(0)
    k1, k2, k3, k4, k5, k6 = jax.random.split(key, 6)

    # 1) Primary NCHW case, tile-aligned (zero-copy path), vs FFT reference.
    B, C, H, W = 2, 4, 16, 16
    pred = jax.random.normal(k1, (B, C, H, W), dtype=jnp.float32)
    target = jax.random.normal(k2, (B, C, H, W), dtype=jnp.float32)
    loss = jax.block_until_ready(fourier_loss(pred, target))
    ref = jax.block_until_ready(_reference_loss_fft(pred, target))
    assert np.allclose(float(loss), float(ref), rtol=1e-3, atol=1e-3), (
        float(loss), float(ref))

    # 2) Non-tile-aligned shape: exercises the <1-tile jnp epilogue path.
    p2 = jax.random.normal(k3, (2, 3, 17, 23), dtype=jnp.float32)
    t2 = jax.random.normal(k4, (2, 3, 17, 23), dtype=jnp.float32)
    loss2 = jax.block_until_ready(fourier_loss(p2, t2))
    ref2 = jax.block_until_ready(_reference_loss_direct(p2, t2, 2 * 3))
    assert np.allclose(float(loss2), float(ref2), rtol=1e-3, atol=1e-3), (
        float(loss2), float(ref2))

    # 3) Ragged last grid block (n_tiles % tpb != 0): exercises in-kernel mask.
    p3 = jax.random.normal(k5, (1, 5, 32, 32), dtype=jnp.float32)
    t3 = jax.random.normal(k6, (1, 5, 32, 32), dtype=jnp.float32)
    loss3 = jax.block_until_ready(fourier_loss(p3, t3, tiles_per_block=2))
    ref3 = jax.block_until_ready(_reference_loss_direct(p3, t3, 1 * 5))
    assert np.allclose(float(loss3), float(ref3), rtol=1e-3, atol=1e-3), (
        float(loss3), float(ref3))

    # 4) bf16 inputs: exercises dtype-native 16-sublane tiling.
    p4 = pred.astype(jnp.bfloat16)
    t4 = target.astype(jnp.bfloat16)
    loss4 = jax.block_until_ready(fourier_loss(p4, t4))
    ref4 = jax.block_until_ready(_reference_loss_direct(p4, t4, B * C))
    assert np.allclose(float(loss4), float(ref4), rtol=1e-3, atol=1e-3), (
        float(loss4), float(ref4))

    print("KERNEL_OK")
</pallas_src>

<mosaic_0001>
module attributes {stable_mosaic.version = 11 : i64} {
  func.func @kernel(%arg0: i32, %arg1: memref<1x8x128xf32, #tpu.memory_space<vmem>>, %arg2: memref<1x8x128xf32, #tpu.memory_space<vmem>>, %arg3: memref<8x128xf32, #tpu.memory_space<vmem>>) attributes {dimension_semantics = [#tpu.dimension_semantics<parallel>], iteration_bounds = array<i64: 2>, scalar_prefetch = 0 : i64, scratch_operands = 0 : i64, tpu.core_type = #tpu.core_type<tc>, window_params = [{transform_indices = @transform_0, window_bounds = array<i64: 1, 8, 128>}, {transform_indices = @transform_1, window_bounds = array<i64: 1, 8, 128>}, {transform_indices = @transform_2, window_bounds = array<i64: 8, 128>}]} {
    %cst = arith.constant 0.000000e+00 : f32
    %0 = vector.broadcast %cst : f32 to vector<8x128xf32>
    %c0_i32 = arith.constant 0 : i32
    %c1_i32 = arith.constant 1 : i32
    %1 = arith.muli %c0_i32, %c1_i32 : i32
    %2 = tpu.assume_multiple %1, 1 : i32
    %3 = arith.index_cast %2 : i32 to index
    %c0 = arith.constant 0 : index
    %c0_0 = arith.constant 0 : index
    %4 = vector.load %arg1[%3, %c0, %c0_0] : memref<1x8x128xf32, #tpu.memory_space<vmem>>, vector<1x8x128xf32>
    %5 = arith.index_cast %2 : i32 to index
    %c0_1 = arith.constant 0 : index
    %c0_2 = arith.constant 0 : index
    %6 = vector.load %arg2[%5, %c0_1, %c0_2] : memref<1x8x128xf32, #tpu.memory_space<vmem>>, vector<1x8x128xf32>
    %7 = arith.subf %4, %6 : vector<1x8x128xf32>
    %8 = arith.mulf %7, %7 : vector<1x8x128xf32>
    %cst_3 = arith.constant dense<0.000000e+00> : vector<8x128xf32>
    %9 = vector.multi_reduction <add>, %8, %cst_3 [0] : vector<1x8x128xf32> to vector<8x128xf32>
    %10 = arith.addf %0, %9 : vector<8x128xf32>
    %c1_i32_4 = arith.constant 1 : i32
    %c0_5 = arith.constant 0 : index
    %c0_6 = arith.constant 0 : index
    %11 = vector.load %arg3[%c0_5, %c0_6] : memref<8x128xf32, #tpu.memory_space<vmem>>, vector<8x128xf32>
    tpu.vector_store %arg3[%c0_5, %c0_6], %10 {strides = array<i32>} : memref<8x128xf32, #tpu.memory_space<vmem>>, vector<8x128xf32>,
    return
  }
  func.func @transform_0(%arg0: i32) -> (i32, i32, i32) {
    %c0_i32 = arith.constant 0 : i32
    %c0_i32_0 = arith.constant 0 : i32
    %c0_i32_1 = arith.constant 0 : i32
    return %arg0, %c0_i32, %c0_i32_0 : i32, i32, i32
  }
  func.func @transform_1(%arg0: i32) -> (i32, i32, i32) {
    %c0_i32 = arith.constant 0 : i32
    %c0_i32_0 = arith.constant 0 : i32
    %c0_i32_1 = arith.constant 0 : i32
    return %arg0, %c0_i32, %c0_i32_0 : i32, i32, i32
  }
  func.func @transform_2(%arg0: i32) -> (i32, i32) {
    %c0_i32 = arith.constant 0 : i32
    %c0_i32_0 = arith.constant 0 : i32
    return %arg0, %c0_i32 : i32, i32
  }
}

</mosaic_0001>

<bundles_post_ra>
// kernel: tpu_custom_call.1
= control target key start
LH: loop header
LB: loop body
LE: loop exit
PB: predicated region body
PF: predicated region fallthrough
CT: control target
= control target key end

     0   :  { %7 = vsyncpa [#allocation3], 0  ;;  %s692_s0 = inlined_call_operand.hbm [shape: f32[2,8,128], index: 0, kind: input, shape index: {}]   ;;  %s693_s1 = inlined_call_operand.hbm [shape: f32[2,8,128], index: 1, kind: input, shape index: {}]   ;;  %s694_s2 = inlined_call_operand.hbm [shape: f32[16,128], index: 2, kind: output, shape index: {}]  }
   0x1   :  { %9 = vsyncpa [#allocation3 + $0x1], 0 }
   0x2   :  { %10 = vsyncpa [#allocation6], 0 }
   0x3   :  { %12 = vsyncpa [#allocation6 + $0x1], 0 }
   0x4   :  { %13 = vsyncpa [#allocation4], 0 }
   0x5   :  { %15 = vsyncpa [#allocation4 + $0x1], 0  ;;  %s532_s9 = smov 0   ;;  %s534_s10 = smov 0  }
   0x6   :  { %s536_s11 = smov 0   ;;  %s538_s12 = smov 0  }
   0x7 LB: > { %s553_s13 = sadd.s32 4294967295, %s515_s12   ;;  %s319_s14 = sadd.s32 4294967294, %s515_s12   ;;  %s515_s12 = sphi %s538_s12, %s705_s12   ;;  %s511_s11 = sphi %s536_s11, %s704_s11   ;;  %s507_s10 = sphi %s534_s10, %s703_s10   ;;  %s503_s9 = sphi %s532_s9, %s702_s9  }
   0x8   : > { %s557_s15 = sadd.s32 1, %s515_s12   ;;  %s28_s16 = sadd.s32 1, %s511_s11 }
   0x9   : > { %s25_s17 = ssub.s32 %s515_s12, %s557_s15  ;;  %p35_p0 = scmp.ne.s32.totalorder %s511_s11, %s507_s10 }
   0xa   : > { %p26_p1 = scmp.eq.s32.totalorder %s25_s17, 0  ;;  %p36_p2 = scmp.eq.s32.totalorder %s515_s12, 0 }
   0xb   : > { %p41_p3 = scmp.ne.s32.totalorder %s507_s10, %s503_s9  ;;  %p42_p4 = scmp.eq.s32.totalorder %s553_s13, 0 }
   0xc   : > { %s569_s18 = scalar_select %p26_p1, %s511_s11, %s28_s16  }
   0xd   : > { %p571_p5 = por %p36_p2, %p35_p0  ;;  %p575_p6 = por %p42_p4, %p41_p3 }
   0xe   : > { %p91_p7 = scmp.eq.s32.totalorder %s553_s13, 1  ;;  %p97_p8 = scmp.eq.s32.totalorder %s319_s14, 1 }
   0xf   : > { %p351_p10 = scmp.lt.s32.totalorder %s515_s12, 2  ;;  %s591_s23 = sand.u32 1, %s511_s11  }
  0x10   : > { %p582_p11 = por %p91_p7, %p35_p0  ;;  %p586_p12 = por %p97_p8, %p41_p3 }
  0x11   : > { %s323_s24 = sshll.u32 %s515_s12, 3  ;;  %s322_s25 = sshll.u32 %s591_s23, 3 }
  0x12   : > { %s125_s28 = scalar_lea.hbm %s692_s0, %s323_s24  ;;  %s121_s30 = scalar_lea.vmem [#allocation2], %s322_s25 }
  0x13   : > { %s127_s29 = sshll.u32 %s125_s28, 4  ;;  %s129_s3 = sshll.u32 %s121_s30, 4  ;;  %s128_s29 = int_to_ptr.hbm [resolvable:$true] %s127_s29  ;;  %s130_s3 = int_to_ptr.vmem [resolvable:$true] %s129_s3 }
  0x14   : > { %p600_p13 = pnand %p351_p10, %p571_p5  ;;  %p326_p0 = scmp.ge.s32.totalorder %s515_s12, 1 }
  0x15   : > { %p153_p1 = scmp.lt.s32.totalorder %s515_s12, 3  ;;  %s118_s5 = scalar_lea.sflag [#allocation3], %s591_s23 }
  0x16   : > { %s385_s6 = sshra.s32 %s128_s29, 4  ;;  %p389_p3 = pneg %p600_p13  ;;  %s386_s6 = int_to_ptr.hbm [resolvable:$true] %s385_s6 }
  0x17   : > { %s387_s7 = scalar_lea.hbm %s386_s6, 8  ;;  %s392_s16 = scalar_lea.hbm %s692_s0, 16 }
  0x18   : > { %p388_p2 = scmp.ne.s32.totalorder %s386_s6, %s387_s7  ;;  %p393_p5 = scmp.lt.s32.totalorder %s386_s6, %s692_s0 }
  0x19   : > { %p394_p8 = scmp.lt.s32.totalorder %s392_s16, %s387_s7 }
  0x1a   : > { %p390_p4 = pnand %p389_p3, %p388_p2 }
  0x1b   : > { %p395_p10 = por %p394_p8, %p393_p5 }
  0x1c   : > { %p391_p7 = pneg %p390_p4 }
  0x1e   : > { %p396_p9 = pnand %p395_p10, %p391_p7 }
  0x20   : > { %399 = shalt.err (!%p396_p9)
}
  0x21   : > { %343 = dma.hbm_to_vmem [thread:$0]  (!%p600_p13), %s128_s29, 128, %s130_s3, %s118_s5  }
  0x22   : > { %p624_p2 = pnand %p326_p0, %p153_p1  ;;  %s144_s30 = scalar_lea.hbm %s693_s1, %s323_s24 }
  0x23   : > { %s146_s6 = sshll.u32 %s144_s30, 4  ;;  %s140_s7 = scalar_lea.vmem [#allocation5], %s322_s25  ;;  %s147_s6 = int_to_ptr.hbm [resolvable:$true] %s146_s6 }
  0x24   : > { %s148_s8 = sshll.u32 %s140_s7, 4  ;;  %s137_s14 = scalar_lea.sflag [#allocation6], %s591_s23  ;;  %s149_s8 = int_to_ptr.vmem [resolvable:$true] %s148_s8 }
  0x25   : > { %s415_s16 = sshra.s32 %s147_s6, 4  ;;  %s422_s5 = scalar_lea.hbm %s693_s1, 16  ;;  %s416_s16 = int_to_ptr.hbm [resolvable:$true] %s415_s16 }
  0x26   : > { %s417_s17 = scalar_lea.hbm %s416_s16, 8  ;;  %p423_p4 = scmp.lt.s32.totalorder %s416_s16, %s693_s1 }
  0x27   : > { %p418_p9 = scmp.ne.s32.totalorder %s416_s16, %s417_s17  ;;  %p424_p7 = scmp.lt.s32.totalorder %s422_s5, %s417_s17 }
  0x29   : > { %p420_p0 = pnand %p418_p9, %p389_p3  ;;  %p425_p5 = por %p424_p7, %p423_p4 }
  0x2b   : > { %p421_p1 = pneg %p420_p0 }
  0x2d   : > { %p426_p8 = pnand %p425_p5, %p421_p1 }
  0x2f   : > { %429 = shalt.err (!%p426_p8)
}
  0x30   : > { %346 = dma.hbm_to_vmem [thread:$0]  (!%p600_p13), %s147_s6, 128, %s149_s8, %s137_s14  }
  0x31   : > { %157 = sbr.rel (%p624_p2) target bundleno = 72 (0x48), region = 28  ;;  %s646_s23 = sand.u32 (!%p624_p2), 1, %s507_s10  }
  0x32   : > { %s327_s25 = sshll.u32 (!%p624_p2), %s646_s23, 3  ;;  %s160_s27 = scalar_lea.sflag (!%p624_p2), [#allocation3], %s646_s23 }
  0x33   : > { %s163_s28 = scalar_lea.vmem (!%p624_p2), [#allocation2], %s327_s25 }
  0x36   : > { %490 = dma.done.wait (%p575_p6), %s160_s27, 128  }
  0x37   : > { %492 = vsyncadd (%p575_p6), %s160_s27, 4294967168  ;;  %s170_s4 = scalar_lea.sflag [#allocation6], %s646_s23  ;;  %s173_s30 = scalar_lea.vmem [#allocation5], %s327_s25 }
  0x38   : > { %494 = dma.done.wait (%p575_p6), %s170_s4, 128  }
  0x39   : > { %496 = vsyncadd (%p575_p6), %s170_s4, 4294967168  ;;  %s331_s26 = sshll.u32 %s553_s13, 3  ;;  %v202_v0 = vld [vmem:[%s163_s28] sm:$0xff]  ;;  %v204_v1 = vld [vmem:[%s173_s30] sm:$0xff]  ;;  %s199_s14 = scalar_lea.vmem [#allocation7], %s327_s25 }
  0x3a   : > { %s221_s8 = scalar_lea.hbm %s694_s2, %s331_s26  ;;  %s223_s16 = sshll.u32 %s199_s14, 4  ;;  %v205_v2 = vsub.f32 %v202_v0, %v204_v1  ;;  %s224_s16 = int_to_ptr.vmem [resolvable:$true] %s223_s16 }
  0x3b   : > { %s225_s17 = sshll.u32 %s221_s8, 4  ;;  %s211_s20 = scalar_lea.sflag [#allocation4], %s646_s23  ;;  %s226_s17 = int_to_ptr.hbm [resolvable:$true] %s225_s17 }
  0x3c   : > { %v206_v3 = vmul.f32 %v205_v2, %v205_v2  ;;  %s459_s29 = sshra.s32 %s226_s17, 4  ;;  %s465_s19 = scalar_lea.hbm %s694_s2, 16  ;;  %s460_s29 = int_to_ptr.hbm [resolvable:$true] %s459_s29 }
  0x3d   : > { %s461_s3 = scalar_lea.hbm %s460_s29, 8  ;;  %p466_p10 = scmp.lt.s32.totalorder %s460_s29, %s694_s2 }
  0x3e   : > { %209 = vst [vmem:[%s199_s14] sm:$0xff] %v206_v3  ;;  %p462_p6 = scmp.ne.s32.totalorder %s460_s29, %s461_s3  ;;  %p467_p2 = scmp.lt.s32.totalorder %s465_s19, %s461_s3 }
  0x40   : > { %p463_p13 = pnand %p462_p6, %p582_p11  ;;  %p468_p9 = por %p467_p2, %p466_p10 }
  0x42   : > { %p464_p3 = pneg %p463_p13 }
  0x44   : > { %p469_p0 = pnand %p468_p9, %p464_p3 }
  0x46   : > { %472 = shalt.err (!%p469_p0)
}
  0x47   : > { %338 = dma.vmem_to_hbm [thread:$0]  (%p582_p11), %s224_s16, 128, %s226_s17, %s211_s20  }
  0x48 PF: > { %s237_s23 = sand.u32 1, %s503_s9   ;;  %p701_p1 = scmp.ge.s32.totalorder %s515_s12, 2 }
  0x49   : > { %s238_s27 = scalar_lea.sflag [#allocation4], %s237_s23 }
  0x4a   : > { %p348_p4 = pnand %p701_p1, %p586_p12 }
  0x4c   : > { %p349_p7 = pneg %p348_p4 }
  0x4e   : > { %498 = dma.done.wait (%p349_p7), %s238_s27, 128  }
  0x4f   : > { %500 = vsyncadd (%p349_p7), %s238_s27, 4294967168  ;;  %p18_p5 = scmp.ge.s32.totalorder %s557_s15, 4   ;;  %s702_s9 = smov %s507_s10 }
  0x50   : > { %s703_s10 = smov %s511_s11  ;;  %s704_s11 = smov %s569_s18 }
  0x51   : > { %s705_s12 = smov %s557_s15  ;;  %20 = sbr.rel (!%p18_p5) target bundleno = 7 (0x7), region = 88 }
  0x56   :  { %244 = vsyncpa [#allocation3], 1 }
  0x57   :  { %246 = vsyncpa [#allocation3 + $0x1], 1 }
  0x58   :  { %247 = vsyncpa [#allocation6], 1 }
  0x59   :  { %249 = vsyncpa [#allocation6 + $0x1], 1 }
  0x5a   :  { %250 = vsyncpa [#allocation4], 1 }
  0x5b   :  { %252 = vsyncpa [#allocation4 + $0x1], 1 }

</bundles_post_ra>
